<compile_context>
chip_gen: v6e
topology: v6e:2x2x1
jax: 0.10.0
libtpu: 0.0.40
codegen_flags: <defaults>
</compile_context>

<pallas_src>
import jax
import jax.numpy as jnp
import numpy as np
from jax import lax
from jax.experimental import pallas as pl
from jax.experimental.pallas import tpu as pltpu

categories = 1
features = 1
inputs = 8

IN_DIM = inputs * categories          # 8
LAT = features                        # 1
ENC_H = 4                             # encoder hidden width
DEC_H = 4                             # decoder hidden width
OUT_DIM = IN_DIM + 2 * LAT            # 10 rows: [x_hat | mu | logvar]
IN_ROWS = IN_DIM + LAT                # 9 rows:  [x | eps]

# Flat SMEM parameter-vector offsets (row-major weights, torch (out, in) order).
OFF_W1 = 0                            # (4, 8)
OFF_B1 = OFF_W1 + ENC_H * IN_DIM      # 32
OFF_W2 = OFF_B1 + ENC_H               # 36, (2, 4)
OFF_B2 = OFF_W2 + 2 * LAT * ENC_H     # 44
OFF_W3 = OFF_B2 + 2 * LAT             # 46, (4, 1)
OFF_B3 = OFF_W3 + DEC_H * LAT         # 50
OFF_W4 = OFF_B3 + DEC_H               # 54, (8, 4)
OFF_B4 = OFF_W4 + IN_DIM * DEC_H      # 86
N_PARAMS = OFF_B4 + IN_DIM            # 94


def vae_kernel(p_ref, xin_ref, out_ref):
    # p_ref:   SMEM f32[94] flat parameter vector
    # xin_ref: VMEM (9, TB)  rows 0..7 = x features, row 8 = eps (batch on lanes)
    # out_ref: VMEM (10, TB) rows 0..7 = x_hat, row 8 = mu, row 9 = logvar

    # One-hot sublane columns used to assemble (8,1) weight/bias columns from
    # SMEM scalars (unused rows are exactly 0 -> padded sublanes stay benign).
    row = lax.broadcasted_iota(jnp.int32, (8, 1), 0)
    onehot = [(row == j).astype(jnp.float32) for j in range(8)]

    def col(idx_of_row, n_rows):
        c = p_ref[idx_of_row(0)] * onehot[0]
        for j in range(1, n_rows):
            c = c + p_ref[idx_of_row(j)] * onehot[j]
        return c                                       # (8, 1)

    # ---- encoder Linear(8, 4) + Tanh : dense (8, TB) VPU MACs ----
    acc1 = col(lambda j: OFF_B1 + j, ENC_H)
    for k in range(IN_DIM):
        wk = col(lambda j, k=k: OFF_W1 + j * IN_DIM + k, ENC_H)
        acc1 = acc1 + wk * xin_ref[k:k + 1, :]         # (8,1)*(1,TB) -> (8,TB)
    h1 = jnp.tanh(acc1)                                # rows 4..7 are tanh(0)=0

    # ---- encoder Linear(4, 2): row 0 = mu, row 1 = logvar ----
    acc2 = col(lambda j: OFF_B2 + j, 2 * LAT)
    for k in range(ENC_H):
        wk = col(lambda j, k=k: OFF_W2 + j * ENC_H + k, 2 * LAT)
        acc2 = acc2 + wk * h1[k:k + 1, :]              # (8, TB)
    mu = acc2[0:1, :]                                  # (1, TB)
    logvar = acc2[1:2, :]                              # (1, TB)

    # ---- reparameterize: z = eps * exp(0.5 * logvar) + mu ----
    eps = xin_ref[IN_DIM:IN_DIM + 1, :]                # (1, TB)
    z = eps * jnp.exp(0.5 * logvar) + mu               # (1, TB)

    # ---- decoder Linear(1, 4) + Tanh (K=1 -> broadcast multiply) ----
    w3 = col(lambda j: OFF_W3 + j, DEC_H)
    b3 = col(lambda j: OFF_B3 + j, DEC_H)
    d1 = jnp.tanh(w3 * z + b3)                         # (8, TB)

    # ---- decoder Linear(4, 8) ----
    acc3 = col(lambda j: OFF_B4 + j, IN_DIM)
    for k in range(DEC_H):
        wk = col(lambda j, k=k: OFF_W4 + j * DEC_H + k, IN_DIM)
        acc3 = acc3 + wk * d1[k:k + 1, :]              # (8, TB)

    # Direct sliced writes (no lane-axis concat, lane-dense stores).
    out_ref[0:IN_DIM, :] = acc3
    out_ref[IN_DIM:IN_DIM + 1, :] = mu
    out_ref[IN_DIM + 1:OUT_DIM, :] = logvar


def vae_forward(x, eps, param_vec):
    """x: (B, 8) f32, eps: (B, 1) f32, param_vec: (94,) f32.
    Returns (x_hat, mu, logvar)."""
    B = x.shape[0]

    # Lane tile: multiple of 128, capped at 8192, sized so that large batches
    # yield >= 2 grid tiles (engages both TensorCores on v7x via "parallel").
    half = -(-B // 2)
    TB = min(8192, max(128, ((half + 127) // 128) * 128))
    num_tiles = -(-B // TB)
    Bp = num_tiles * TB

    # Single lane-dense input slab: rows 0..7 = x^T, row 8 = eps^T.
    xin = jnp.concatenate([x, eps], axis=1).T          # (9, B)
    if Bp != B:
        xin = jnp.pad(xin, ((0, 0), (0, Bp - B)))      # zero-padded lanes

    out = pl.pallas_call(
        vae_kernel,
        out_shape=jax.ShapeDtypeStruct((OUT_DIM, Bp), jnp.float32),
        grid=(num_tiles,),
        in_specs=[
            pl.BlockSpec(memory_space=pltpu.MemorySpace.SMEM),   # params (f32[94])
            pl.BlockSpec((IN_ROWS, TB), lambda i: (0, i)),       # (9, TB) slab
        ],
        out_specs=pl.BlockSpec((OUT_DIM, TB), lambda i: (0, i)),  # (10, TB) slab
        compiler_params=pltpu.CompilerParams(
            dimension_semantics=("parallel",)),
    )(param_vec, xin)

    x_hat = out[0:IN_DIM, :B].T
    mu = out[IN_DIM:IN_DIM + 1, :B].T
    logvar = out[IN_DIM + 1:OUT_DIM, :B].T
    return x_hat, mu, logvar


def init_params(key):
    """PyTorch-nn.Linear-style uniform(-1/sqrt(fan_in), +) init.
    Returns raw (weight (out,in), bias (out,)) tuples."""
    def linear(k, fan_in, fan_out):
        kw, kb = jax.random.split(k)
        bound = 1.0 / jnp.sqrt(fan_in)
        w = jax.random.uniform(kw, (fan_out, fan_in), jnp.float32, -bound, bound)
        b = jax.random.uniform(kb, (fan_out,), jnp.float32, -bound, bound)
        return w, b

    k1, k2, k3, k4 = jax.random.split(key, 4)
    w1, b1 = linear(k1, IN_DIM, ENC_H)        # encoder Linear(8, 4)
    w2, b2 = linear(k2, ENC_H, 2 * LAT)       # encoder Linear(4, 2)
    w3, b3 = linear(k3, LAT, DEC_H)           # decoder Linear(1, 4)
    w4, b4 = linear(k4, DEC_H, IN_DIM)        # decoder Linear(4, 8)
    return (w1, b1, w2, b2, w3, b3, w4, b4)


def pack_params(raw):
    """Flatten all weights/biases into one f32[94] vector for SMEM."""
    w1, b1, w2, b2, w3, b3, w4, b4 = raw
    return jnp.concatenate([
        w1.reshape(-1), b1.reshape(-1),
        w2.reshape(-1), b2.reshape(-1),
        w3.reshape(-1), b3.reshape(-1),
        w4.reshape(-1), b4.reshape(-1)]).astype(jnp.float32)


def vae_ref(x, eps, raw):
    """Pure-JAX reference of the PyTorch forward (eps supplied externally)."""
    w1, b1, w2, b2, w3, b3, w4, b4 = raw
    h1 = jnp.tanh(x @ w1.T + b1)
    h = h1 @ w2.T + b2
    mu = h[:, 0:LAT]
    logvar = h[:, LAT:2 * LAT]
    z = eps * jnp.exp(0.5 * logvar) + mu
    d1 = jnp.tanh(z @ w3.T + b3)
    x_hat = d1 @ w4.T + b4
    return x_hat, mu, logvar


if __name__ == "__main__":
    key = jax.random.PRNGKey(0)
    k_params, k_x, k_eps = jax.random.split(key, 3)

    B = 8
    raw_params = init_params(k_params)
    pvec = pack_params(raw_params)
    x = jax.random.normal(k_x, (B, IN_DIM), jnp.float32)
    # TODO(synk): torch.randn_like(std) is generated host-side with jax.random
    # (statistically equivalent standard normal, not bit-identical to torch).
    eps = jax.random.normal(k_eps, (B, LAT), jnp.float32)

    x_hat, mu, logvar = vae_forward(x, eps, pvec)
    jax.block_until_ready((x_hat, mu, logvar))

    # shape sanity checks
    assert x_hat.shape == (B, IN_DIM)
    assert mu.shape == (B, LAT)
    assert logvar.shape == (B, LAT)

    # numerical check against pure-JAX reference
    rx, rmu, rlv = vae_ref(x, eps, raw_params)
    np.testing.assert_allclose(np.asarray(x_hat), np.asarray(rx), atol=2e-4, rtol=2e-4)
    np.testing.assert_allclose(np.asarray(mu), np.asarray(rmu), atol=2e-4, rtol=2e-4)
    np.testing.assert_allclose(np.asarray(logvar), np.asarray(rlv), atol=2e-4, rtol=2e-4)

    print("KERNEL_OK")
</pallas_src>

<mosaic_0001>
module attributes {stable_mosaic.version = 11 : i64} {
  func.func @vae_kernel(%arg0: i32, %arg1: memref<94xf32, #tpu.memory_space<smem>>, %arg2: memref<9x128xf32, #tpu.memory_space<vmem>>, %arg3: memref<10x128xf32, #tpu.memory_space<vmem>>) attributes {dimension_semantics = [#tpu.dimension_semantics<parallel>], iteration_bounds = array<i64: 1>, scalar_prefetch = 0 : i64, scratch_operands = 0 : i64, tpu.core_type = #tpu.core_type<tc>, window_params = [{transform_indices = @transform_0, window_bounds = array<i64: 94>}, {transform_indices = @transform_1, window_bounds = array<i64: 9, 128>}, {transform_indices = @transform_2, window_bounds = array<i64: 10, 128>}]} {
    %0 = tpu.iota {dimensions = array<i32: 0>} : vector<8x1xi32>
    %c0_i32 = arith.constant 0 : i32
    %1 = vector.broadcast %c0_i32 : i32 to vector<8x1xi32>
    %2 = arith.cmpi eq, %0, %1 : vector<8x1xi32>
    %3 = arith.extui %2 : vector<8x1xi1> to vector<8x1xi32>
    %4 = arith.sitofp %3 : vector<8x1xi32> to vector<8x1xf32>
    %c1_i32 = arith.constant 1 : i32
    %5 = vector.broadcast %c1_i32 : i32 to vector<8x1xi32>
    %6 = arith.cmpi eq, %0, %5 : vector<8x1xi32>
    %7 = arith.extui %6 : vector<8x1xi1> to vector<8x1xi32>
    %8 = arith.sitofp %7 : vector<8x1xi32> to vector<8x1xf32>
    %c2_i32 = arith.constant 2 : i32
    %9 = vector.broadcast %c2_i32 : i32 to vector<8x1xi32>
    %10 = arith.cmpi eq, %0, %9 : vector<8x1xi32>
    %11 = arith.extui %10 : vector<8x1xi1> to vector<8x1xi32>
    %12 = arith.sitofp %11 : vector<8x1xi32> to vector<8x1xf32>
    %c3_i32 = arith.constant 3 : i32
    %13 = vector.broadcast %c3_i32 : i32 to vector<8x1xi32>
    %14 = arith.cmpi eq, %0, %13 : vector<8x1xi32>
    %15 = arith.extui %14 : vector<8x1xi1> to vector<8x1xi32>
    %16 = arith.sitofp %15 : vector<8x1xi32> to vector<8x1xf32>
    %c4_i32 = arith.constant 4 : i32
    %17 = vector.broadcast %c4_i32 : i32 to vector<8x1xi32>
    %18 = arith.cmpi eq, %0, %17 : vector<8x1xi32>
    %19 = arith.extui %18 : vector<8x1xi1> to vector<8x1xi32>
    %20 = arith.sitofp %19 : vector<8x1xi32> to vector<8x1xf32>
    %c5_i32 = arith.constant 5 : i32
    %21 = vector.broadcast %c5_i32 : i32 to vector<8x1xi32>
    %22 = arith.cmpi eq, %0, %21 : vector<8x1xi32>
    %23 = arith.extui %22 : vector<8x1xi1> to vector<8x1xi32>
    %24 = arith.sitofp %23 : vector<8x1xi32> to vector<8x1xf32>
    %c6_i32 = arith.constant 6 : i32
    %25 = vector.broadcast %c6_i32 : i32 to vector<8x1xi32>
    %26 = arith.cmpi eq, %0, %25 : vector<8x1xi32>
    %27 = arith.extui %26 : vector<8x1xi1> to vector<8x1xi32>
    %28 = arith.sitofp %27 : vector<8x1xi32> to vector<8x1xf32>
    %c7_i32 = arith.constant 7 : i32
    %29 = vector.broadcast %c7_i32 : i32 to vector<8x1xi32>
    %30 = arith.cmpi eq, %0, %29 : vector<8x1xi32>
    %31 = arith.extui %30 : vector<8x1xi1> to vector<8x1xi32>
    %32 = arith.sitofp %31 : vector<8x1xi32> to vector<8x1xf32>
    %c32 = arith.constant 32 : index
    %33 = memref.load %arg1[%c32] : memref<94xf32, #tpu.memory_space<smem>>
    %34 = vector.broadcast %33 : f32 to vector<8x1xf32>
    %35 = arith.mulf %34, %4 : vector<8x1xf32>
    %c33 = arith.constant 33 : index
    %36 = memref.load %arg1[%c33] : memref<94xf32, #tpu.memory_space<smem>>
    %37 = vector.broadcast %36 : f32 to vector<8x1xf32>
    %38 = arith.mulf %37, %8 : vector<8x1xf32>
    %39 = arith.addf %35, %38 : vector<8x1xf32>
    %c34 = arith.constant 34 : index
    %40 = memref.load %arg1[%c34] : memref<94xf32, #tpu.memory_space<smem>>
    %41 = vector.broadcast %40 : f32 to vector<8x1xf32>
    %42 = arith.mulf %41, %12 : vector<8x1xf32>
    %43 = arith.addf %39, %42 : vector<8x1xf32>
    %c35 = arith.constant 35 : index
    %44 = memref.load %arg1[%c35] : memref<94xf32, #tpu.memory_space<smem>>
    %45 = vector.broadcast %44 : f32 to vector<8x1xf32>
    %46 = arith.mulf %45, %16 : vector<8x1xf32>
    %47 = arith.addf %43, %46 : vector<8x1xf32>
    %c0 = arith.constant 0 : index
    %48 = memref.load %arg1[%c0] : memref<94xf32, #tpu.memory_space<smem>>
    %49 = vector.broadcast %48 : f32 to vector<8x1xf32>
    %50 = arith.mulf %49, %4 : vector<8x1xf32>
    %c8 = arith.constant 8 : index
    %51 = memref.load %arg1[%c8] : memref<94xf32, #tpu.memory_space<smem>>
    %52 = vector.broadcast %51 : f32 to vector<8x1xf32>
    %53 = arith.mulf %52, %8 : vector<8x1xf32>
    %54 = arith.addf %50, %53 : vector<8x1xf32>
    %c16 = arith.constant 16 : index
    %55 = memref.load %arg1[%c16] : memref<94xf32, #tpu.memory_space<smem>>
    %56 = vector.broadcast %55 : f32 to vector<8x1xf32>
    %57 = arith.mulf %56, %12 : vector<8x1xf32>
    %58 = arith.addf %54, %57 : vector<8x1xf32>
    %c24 = arith.constant 24 : index
    %59 = memref.load %arg1[%c24] : memref<94xf32, #tpu.memory_space<smem>>
    %60 = vector.broadcast %59 : f32 to vector<8x1xf32>
    %61 = arith.mulf %60, %16 : vector<8x1xf32>
    %62 = arith.addf %58, %61 : vector<8x1xf32>
    %c0_0 = arith.constant 0 : index
    %c0_1 = arith.constant 0 : index
    %63 = vector.load %arg2[%c0_0, %c0_1] : memref<9x128xf32, #tpu.memory_space<vmem>>, vector<1x128xf32>
    %64 = vector.broadcast %62 : vector<8x1xf32> to vector<8x128xf32>
    %65 = vector.broadcast %63 : vector<1x128xf32> to vector<8x128xf32>
    %66 = arith.mulf %64, %65 : vector<8x128xf32>
    %67 = vector.broadcast %47 : vector<8x1xf32> to vector<8x128xf32>
    %68 = arith.addf %67, %66 : vector<8x128xf32>
    %c1 = arith.constant 1 : index
    %69 = memref.load %arg1[%c1] : memref<94xf32, #tpu.memory_space<smem>>
    %70 = vector.broadcast %69 : f32 to vector<8x1xf32>
    %71 = arith.mulf %70, %4 : vector<8x1xf32>
    %c9 = arith.constant 9 : index
    %72 = memref.load %arg1[%c9] : memref<94xf32, #tpu.memory_space<smem>>
    %73 = vector.broadcast %72 : f32 to vector<8x1xf32>
    %74 = arith.mulf %73, %8 : vector<8x1xf32>
    %75 = arith.addf %71, %74 : vector<8x1xf32>
    %c17 = arith.constant 17 : index
    %76 = memref.load %arg1[%c17] : memref<94xf32, #tpu.memory_space<smem>>
    %77 = vector.broadcast %76 : f32 to vector<8x1xf32>
    %78 = arith.mulf %77, %12 : vector<8x1xf32>
    %79 = arith.addf %75, %78 : vector<8x1xf32>
    %c25 = arith.constant 25 : index
    %80 = memref.load %arg1[%c25] : memref<94xf32, #tpu.memory_space<smem>>
    %81 = vector.broadcast %80 : f32 to vector<8x1xf32>
    %82 = arith.mulf %81, %16 : vector<8x1xf32>
    %83 = arith.addf %79, %82 : vector<8x1xf32>
    %c1_2 = arith.constant 1 : index
    %c0_3 = arith.constant 0 : index
    %84 = vector.load %arg2[%c1_2, %c0_3] : memref<9x128xf32, #tpu.memory_space<vmem>>, vector<1x128xf32>
    %85 = vector.broadcast %83 : vector<8x1xf32> to vector<8x128xf32>
    %86 = vector.broadcast %84 : vector<1x128xf32> to vector<8x128xf32>
    %87 = arith.mulf %85, %86 : vector<8x128xf32>
    %88 = arith.addf %68, %87 : vector<8x128xf32>
    %c2 = arith.constant 2 : index
    %89 = memref.load %arg1[%c2] : memref<94xf32, #tpu.memory_space<smem>>
    %90 = vector.broadcast %89 : f32 to vector<8x1xf32>
    %91 = arith.mulf %90, %4 : vector<8x1xf32>
    %c10 = arith.constant 10 : index
    %92 = memref.load %arg1[%c10] : memref<94xf32, #tpu.memory_space<smem>>
    %93 = vector.broadcast %92 : f32 to vector<8x1xf32>
    %94 = arith.mulf %93, %8 : vector<8x1xf32>
    %95 = arith.addf %91, %94 : vector<8x1xf32>
    %c18 = arith.constant 18 : index
    %96 = memref.load %arg1[%c18] : memref<94xf32, #tpu.memory_space<smem>>
    %97 = vector.broadcast %96 : f32 to vector<8x1xf32>
    %98 = arith.mulf %97, %12 : vector<8x1xf32>
    %99 = arith.addf %95, %98 : vector<8x1xf32>
    %c26 = arith.constant 26 : index
    %100 = memref.load %arg1[%c26] : memref<94xf32, #tpu.memory_space<smem>>
    %101 = vector.broadcast %100 : f32 to vector<8x1xf32>
    %102 = arith.mulf %101, %16 : vector<8x1xf32>
    %103 = arith.addf %99, %102 : vector<8x1xf32>
    %c2_4 = arith.constant 2 : index
    %c0_5 = arith.constant 0 : index
    %104 = vector.load %arg2[%c2_4, %c0_5] : memref<9x128xf32, #tpu.memory_space<vmem>>, vector<1x128xf32>
    %105 = vector.broadcast %103 : vector<8x1xf32> to vector<8x128xf32>
    %106 = vector.broadcast %104 : vector<1x128xf32> to vector<8x128xf32>
    %107 = arith.mulf %105, %106 : vector<8x128xf32>
    %108 = arith.addf %88, %107 : vector<8x128xf32>
    %c3 = arith.constant 3 : index
    %109 = memref.load %arg1[%c3] : memref<94xf32, #tpu.memory_space<smem>>
    %110 = vector.broadcast %109 : f32 to vector<8x1xf32>
    %111 = arith.mulf %110, %4 : vector<8x1xf32>
    %c11 = arith.constant 11 : index
    %112 = memref.load %arg1[%c11] : memref<94xf32, #tpu.memory_space<smem>>
    %113 = vector.broadcast %112 : f32 to vector<8x1xf32>
    %114 = arith.mulf %113, %8 : vector<8x1xf32>
    %115 = arith.addf %111, %114 : vector<8x1xf32>
    %c19 = arith.constant 19 : index
    %116 = memref.load %arg1[%c19] : memref<94xf32, #tpu.memory_space<smem>>
    %117 = vector.broadcast %116 : f32 to vector<8x1xf32>
    %118 = arith.mulf %117, %12 : vector<8x1xf32>
    %119 = arith.addf %115, %118 : vector<8x1xf32>
    %c27 = arith.constant 27 : index
    %120 = memref.load %arg1[%c27] : memref<94xf32, #tpu.memory_space<smem>>
    %121 = vector.broadcast %120 : f32 to vector<8x1xf32>
    %122 = arith.mulf %121, %16 : vector<8x1xf32>
    %123 = arith.addf %119, %122 : vector<8x1xf32>
    %c3_6 = arith.constant 3 : index
    %c0_7 = arith.constant 0 : index
    %124 = vector.load %arg2[%c3_6, %c0_7] : memref<9x128xf32, #tpu.memory_space<vmem>>, vector<1x128xf32>
    %125 = vector.broadcast %123 : vector<8x1xf32> to vector<8x128xf32>
    %126 = vector.broadcast %124 : vector<1x128xf32> to vector<8x128xf32>
    %127 = arith.mulf %125, %126 : vector<8x128xf32>
    %128 = arith.addf %108, %127 : vector<8x128xf32>
    %c4 = arith.constant 4 : index
    %129 = memref.load %arg1[%c4] : memref<94xf32, #tpu.memory_space<smem>>
    %130 = vector.broadcast %129 : f32 to vector<8x1xf32>
    %131 = arith.mulf %130, %4 : vector<8x1xf32>
    %c12 = arith.constant 12 : index
    %132 = memref.load %arg1[%c12] : memref<94xf32, #tpu.memory_space<smem>>
    %133 = vector.broadcast %132 : f32 to vector<8x1xf32>
    %134 = arith.mulf %133, %8 : vector<8x1xf32>
    %135 = arith.addf %131, %134 : vector<8x1xf32>
    %c20 = arith.constant 20 : index
    %136 = memref.load %arg1[%c20] : memref<94xf32, #tpu.memory_space<smem>>
    %137 = vector.broadcast %136 : f32 to vector<8x1xf32>
    %138 = arith.mulf %137, %12 : vector<8x1xf32>
    %139 = arith.addf %135, %138 : vector<8x1xf32>
    %c28 = arith.constant 28 : index
    %140 = memref.load %arg1[%c28] : memref<94xf32, #tpu.memory_space<smem>>
    %141 = vector.broadcast %140 : f32 to vector<8x1xf32>
    %142 = arith.mulf %141, %16 : vector<8x1xf32>
    %143 = arith.addf %139, %142 : vector<8x1xf32>
    %c4_8 = arith.constant 4 : index
    %c0_9 = arith.constant 0 : index
    %144 = vector.load %arg2[%c4_8, %c0_9] : memref<9x128xf32, #tpu.memory_space<vmem>>, vector<1x128xf32>
    %145 = vector.broadcast %143 : vector<8x1xf32> to vector<8x128xf32>
    %146 = vector.broadcast %144 : vector<1x128xf32> to vector<8x128xf32>
    %147 = arith.mulf %145, %146 : vector<8x128xf32>
    %148 = arith.addf %128, %147 : vector<8x128xf32>
    %c5 = arith.constant 5 : index
    %149 = memref.load %arg1[%c5] : memref<94xf32, #tpu.memory_space<smem>>
    %150 = vector.broadcast %149 : f32 to vector<8x1xf32>
    %151 = arith.mulf %150, %4 : vector<8x1xf32>
    %c13 = arith.constant 13 : index
    %152 = memref.load %arg1[%c13] : memref<94xf32, #tpu.memory_space<smem>>
    %153 = vector.broadcast %152 : f32 to vector<8x1xf32>
    %154 = arith.mulf %153, %8 : vector<8x1xf32>
    %155 = arith.addf %151, %154 : vector<8x1xf32>
    %c21 = arith.constant 21 : index
    %156 = memref.load %arg1[%c21] : memref<94xf32, #tpu.memory_space<smem>>
    %157 = vector.broadcast %156 : f32 to vector<8x1xf32>
    %158 = arith.mulf %157, %12 : vector<8x1xf32>
    %159 = arith.addf %155, %158 : vector<8x1xf32>
    %c29 = arith.constant 29 : index
    %160 = memref.load %arg1[%c29] : memref<94xf32, #tpu.memory_space<smem>>
    %161 = vector.broadcast %160 : f32 to vector<8x1xf32>
    %162 = arith.mulf %161, %16 : vector<8x1xf32>
    %163 = arith.addf %159, %162 : vector<8x1xf32>
    %c5_10 = arith.constant 5 : index
    %c0_11 = arith.constant 0 : index
    %164 = vector.load %arg2[%c5_10, %c0_11] : memref<9x128xf32, #tpu.memory_space<vmem>>, vector<1x128xf32>
    %165 = vector.broadcast %163 : vector<8x1xf32> to vector<8x128xf32>
    %166 = vector.broadcast %164 : vector<1x128xf32> to vector<8x128xf32>
    %167 = arith.mulf %165, %166 : vector<8x128xf32>
    %168 = arith.addf %148, %167 : vector<8x128xf32>
    %c6 = arith.constant 6 : index
    %169 = memref.load %arg1[%c6] : memref<94xf32, #tpu.memory_space<smem>>
    %170 = vector.broadcast %169 : f32 to vector<8x1xf32>
    %171 = arith.mulf %170, %4 : vector<8x1xf32>
    %c14 = arith.constant 14 : index
    %172 = memref.load %arg1[%c14] : memref<94xf32, #tpu.memory_space<smem>>
    %173 = vector.broadcast %172 : f32 to vector<8x1xf32>
    %174 = arith.mulf %173, %8 : vector<8x1xf32>
    %175 = arith.addf %171, %174 : vector<8x1xf32>
    %c22 = arith.constant 22 : index
    %176 = memref.load %arg1[%c22] : memref<94xf32, #tpu.memory_space<smem>>
    %177 = vector.broadcast %176 : f32 to vector<8x1xf32>
    %178 = arith.mulf %177, %12 : vector<8x1xf32>
    %179 = arith.addf %175, %178 : vector<8x1xf32>
    %c30 = arith.constant 30 : index
    %180 = memref.load %arg1[%c30] : memref<94xf32, #tpu.memory_space<smem>>
    %181 = vector.broadcast %180 : f32 to vector<8x1xf32>
    %182 = arith.mulf %181, %16 : vector<8x1xf32>
    %183 = arith.addf %179, %182 : vector<8x1xf32>
    %c6_12 = arith.constant 6 : index
    %c0_13 = arith.constant 0 : index
    %184 = vector.load %arg2[%c6_12, %c0_13] : memref<9x128xf32, #tpu.memory_space<vmem>>, vector<1x128xf32>
    %185 = vector.broadcast %183 : vector<8x1xf32> to vector<8x128xf32>
    %186 = vector.broadcast %184 : vector<1x128xf32> to vector<8x128xf32>
    %187 = arith.mulf %185, %186 : vector<8x128xf32>
    %188 = arith.addf %168, %187 : vector<8x128xf32>
    %c7 = arith.constant 7 : index
    %189 = memref.load %arg1[%c7] : memref<94xf32, #tpu.memory_space<smem>>
    %190 = vector.broadcast %189 : f32 to vector<8x1xf32>
    %191 = arith.mulf %190, %4 : vector<8x1xf32>
    %c15 = arith.constant 15 : index
    %192 = memref.load %arg1[%c15] : memref<94xf32, #tpu.memory_space<smem>>
    %193 = vector.broadcast %192 : f32 to vector<8x1xf32>
    %194 = arith.mulf %193, %8 : vector<8x1xf32>
    %195 = arith.addf %191, %194 : vector<8x1xf32>
    %c23 = arith.constant 23 : index
    %196 = memref.load %arg1[%c23] : memref<94xf32, #tpu.memory_space<smem>>
    %197 = vector.broadcast %196 : f32 to vector<8x1xf32>
    %198 = arith.mulf %197, %12 : vector<8x1xf32>
    %199 = arith.addf %195, %198 : vector<8x1xf32>
    %c31 = arith.constant 31 : index
    %200 = memref.load %arg1[%c31] : memref<94xf32, #tpu.memory_space<smem>>
    %201 = vector.broadcast %200 : f32 to vector<8x1xf32>
    %202 = arith.mulf %201, %16 : vector<8x1xf32>
    %203 = arith.addf %199, %202 : vector<8x1xf32>
    %c7_14 = arith.constant 7 : index
    %c0_15 = arith.constant 0 : index
    %204 = vector.load %arg2[%c7_14, %c0_15] : memref<9x128xf32, #tpu.memory_space<vmem>>, vector<1x128xf32>
    %205 = vector.broadcast %203 : vector<8x1xf32> to vector<8x128xf32>
    %206 = vector.broadcast %204 : vector<1x128xf32> to vector<8x128xf32>
    %207 = arith.mulf %205, %206 : vector<8x128xf32>
    %208 = arith.addf %188, %207 : vector<8x128xf32>
    %209 = math.tanh %208 : vector<8x128xf32>
    %c44 = arith.constant 44 : index
    %210 = memref.load %arg1[%c44] : memref<94xf32, #tpu.memory_space<smem>>
    %211 = vector.broadcast %210 : f32 to vector<8x1xf32>
    %212 = arith.mulf %211, %4 : vector<8x1xf32>
    %c45 = arith.constant 45 : index
    %213 = memref.load %arg1[%c45] : memref<94xf32, #tpu.memory_space<smem>>
    %214 = vector.broadcast %213 : f32 to vector<8x1xf32>
    %215 = arith.mulf %214, %8 : vector<8x1xf32>
    %216 = arith.addf %212, %215 : vector<8x1xf32>
    %c36 = arith.constant 36 : index
    %217 = memref.load %arg1[%c36] : memref<94xf32, #tpu.memory_space<smem>>
    %218 = vector.broadcast %217 : f32 to vector<8x1xf32>
    %219 = arith.mulf %218, %4 : vector<8x1xf32>
    %c40 = arith.constant 40 : index
    %220 = memref.load %arg1[%c40] : memref<94xf32, #tpu.memory_space<smem>>
    %221 = vector.broadcast %220 : f32 to vector<8x1xf32>
    %222 = arith.mulf %221, %8 : vector<8x1xf32>
    %223 = arith.addf %219, %222 : vector<8x1xf32>
    %224 = vector.extract_strided_slice %209 {offsets = [0, 0], sizes = [1, 128], strides = [1, 1]} : vector<8x128xf32> to vector<1x128xf32>
    %225 = vector.broadcast %223 : vector<8x1xf32> to vector<8x128xf32>
    %226 = vector.broadcast %224 : vector<1x128xf32> to vector<8x128xf32>
    %227 = arith.mulf %225, %226 : vector<8x128xf32>
    %228 = vector.broadcast %216 : vector<8x1xf32> to vector<8x128xf32>
    %229 = arith.addf %228, %227 : vector<8x128xf32>
    %c37 = arith.constant 37 : index
    %230 = memref.load %arg1[%c37] : memref<94xf32, #tpu.memory_space<smem>>
    %231 = vector.broadcast %230 : f32 to vector<8x1xf32>
    %232 = arith.mulf %231, %4 : vector<8x1xf32>
    %c41 = arith.constant 41 : index
    %233 = memref.load %arg1[%c41] : memref<94xf32, #tpu.memory_space<smem>>
    %234 = vector.broadcast %233 : f32 to vector<8x1xf32>
    %235 = arith.mulf %234, %8 : vector<8x1xf32>
    %236 = arith.addf %232, %235 : vector<8x1xf32>
    %237 = vector.extract_strided_slice %209 {offsets = [1, 0], sizes = [1, 128], strides = [1, 1]} : vector<8x128xf32> to vector<1x128xf32>
    %238 = vector.broadcast %236 : vector<8x1xf32> to vector<8x128xf32>
    %239 = vector.broadcast %237 : vector<1x128xf32> to vector<8x128xf32>
    %240 = arith.mulf %238, %239 : vector<8x128xf32>
    %241 = arith.addf %229, %240 : vector<8x128xf32>
    %c38 = arith.constant 38 : index
    %242 = memref.load %arg1[%c38] : memref<94xf32, #tpu.memory_space<smem>>
    %243 = vector.broadcast %242 : f32 to vector<8x1xf32>
    %244 = arith.mulf %243, %4 : vector<8x1xf32>
    %c42 = arith.constant 42 : index
    %245 = memref.load %arg1[%c42] : memref<94xf32, #tpu.memory_space<smem>>
    %246 = vector.broadcast %245 : f32 to vector<8x1xf32>
    %247 = arith.mulf %246, %8 : vector<8x1xf32>
    %248 = arith.addf %244, %247 : vector<8x1xf32>
    %249 = vector.extract_strided_slice %209 {offsets = [2, 0], sizes = [1, 128], strides = [1, 1]} : vector<8x128xf32> to vector<1x128xf32>
    %250 = vector.broadcast %248 : vector<8x1xf32> to vector<8x128xf32>
    %251 = vector.broadcast %249 : vector<1x128xf32> to vector<8x128xf32>
    %252 = arith.mulf %250, %251 : vector<8x128xf32>
    %253 = arith.addf %241, %252 : vector<8x128xf32>
    %c39 = arith.constant 39 : index
    %254 = memref.load %arg1[%c39] : memref<94xf32, #tpu.memory_space<smem>>
    %255 = vector.broadcast %254 : f32 to vector<8x1xf32>
    %256 = arith.mulf %255, %4 : vector<8x1xf32>
    %c43 = arith.constant 43 : index
    %257 = memref.load %arg1[%c43] : memref<94xf32, #tpu.memory_space<smem>>
    %258 = vector.broadcast %257 : f32 to vector<8x1xf32>
    %259 = arith.mulf %258, %8 : vector<8x1xf32>
    %260 = arith.addf %256, %259 : vector<8x1xf32>
    %261 = vector.extract_strided_slice %209 {offsets = [3, 0], sizes = [1, 128], strides = [1, 1]} : vector<8x128xf32> to vector<1x128xf32>
    %262 = vector.broadcast %260 : vector<8x1xf32> to vector<8x128xf32>
    %263 = vector.broadcast %261 : vector<1x128xf32> to vector<8x128xf32>
    %264 = arith.mulf %262, %263 : vector<8x128xf32>
    %265 = arith.addf %253, %264 : vector<8x128xf32>
    %266 = vector.extract_strided_slice %265 {offsets = [0, 0], sizes = [1, 128], strides = [1, 1]} : vector<8x128xf32> to vector<1x128xf32>
    %267 = vector.extract_strided_slice %265 {offsets = [1, 0], sizes = [1, 128], strides = [1, 1]} : vector<8x128xf32> to vector<1x128xf32>
    %c8_16 = arith.constant 8 : index
    %c0_17 = arith.constant 0 : index
    %268 = vector.load %arg2[%c8_16, %c0_17] : memref<9x128xf32, #tpu.memory_space<vmem>>, vector<1x128xf32>
    %cst = arith.constant 5.000000e-01 : f32
    %269 = vector.broadcast %cst : f32 to vector<1x128xf32>
    %270 = arith.mulf %269, %267 : vector<1x128xf32>
    %271 = math.exp %270 : vector<1x128xf32>
    %272 = arith.mulf %268, %271 : vector<1x128xf32>
    %273 = arith.addf %272, %266 : vector<1x128xf32>
    %c46 = arith.constant 46 : index
    %274 = memref.load %arg1[%c46] : memref<94xf32, #tpu.memory_space<smem>>
    %275 = vector.broadcast %274 : f32 to vector<8x1xf32>
    %276 = arith.mulf %275, %4 : vector<8x1xf32>
    %c47 = arith.constant 47 : index
    %277 = memref.load %arg1[%c47] : memref<94xf32, #tpu.memory_space<smem>>
    %278 = vector.broadcast %277 : f32 to vector<8x1xf32>
    %279 = arith.mulf %278, %8 : vector<8x1xf32>
    %280 = arith.addf %276, %279 : vector<8x1xf32>
    %c48 = arith.constant 48 : index
    %281 = memref.load %arg1[%c48] : memref<94xf32, #tpu.memory_space<smem>>
    %282 = vector.broadcast %281 : f32 to vector<8x1xf32>
    %283 = arith.mulf %282, %12 : vector<8x1xf32>
    %284 = arith.addf %280, %283 : vector<8x1xf32>
    %c49 = arith.constant 49 : index
    %285 = memref.load %arg1[%c49] : memref<94xf32, #tpu.memory_space<smem>>
    %286 = vector.broadcast %285 : f32 to vector<8x1xf32>
    %287 = arith.mulf %286, %16 : vector<8x1xf32>
    %288 = arith.addf %284, %287 : vector<8x1xf32>
    %c50 = arith.constant 50 : index
    %289 = memref.load %arg1[%c50] : memref<94xf32, #tpu.memory_space<smem>>
    %290 = vector.broadcast %289 : f32 to vector<8x1xf32>
    %291 = arith.mulf %290, %4 : vector<8x1xf32>
    %c51 = arith.constant 51 : index
    %292 = memref.load %arg1[%c51] : memref<94xf32, #tpu.memory_space<smem>>
    %293 = vector.broadcast %292 : f32 to vector<8x1xf32>
    %294 = arith.mulf %293, %8 : vector<8x1xf32>
    %295 = arith.addf %291, %294 : vector<8x1xf32>
    %c52 = arith.constant 52 : index
    %296 = memref.load %arg1[%c52] : memref<94xf32, #tpu.memory_space<smem>>
    %297 = vector.broadcast %296 : f32 to vector<8x1xf32>
    %298 = arith.mulf %297, %12 : vector<8x1xf32>
    %299 = arith.addf %295, %298 : vector<8x1xf32>
    %c53 = arith.constant 53 : index
    %300 = memref.load %arg1[%c53] : memref<94xf32, #tpu.memory_space<smem>>
    %301 = vector.broadcast %300 : f32 to vector<8x1xf32>
    %302 = arith.mulf %301, %16 : vector<8x1xf32>
    %303 = arith.addf %299, %302 : vector<8x1xf32>
    %304 = vector.broadcast %288 : vector<8x1xf32> to vector<8x128xf32>
    %305 = vector.broadcast %273 : vector<1x128xf32> to vector<8x128xf32>
    %306 = arith.mulf %304, %305 : vector<8x128xf32>
    %307 = vector.broadcast %303 : vector<8x1xf32> to vector<8x128xf32>
    %308 = arith.addf %306, %307 : vector<8x128xf32>
    %309 = math.tanh %308 : vector<8x128xf32>
    %c86 = arith.constant 86 : index
    %310 = memref.load %arg1[%c86] : memref<94xf32, #tpu.memory_space<smem>>
    %311 = vector.broadcast %310 : f32 to vector<8x1xf32>
    %312 = arith.mulf %311, %4 : vector<8x1xf32>
    %c87 = arith.constant 87 : index
    %313 = memref.load %arg1[%c87] : memref<94xf32, #tpu.memory_space<smem>>
    %314 = vector.broadcast %313 : f32 to vector<8x1xf32>
    %315 = arith.mulf %314, %8 : vector<8x1xf32>
    %316 = arith.addf %312, %315 : vector<8x1xf32>
    %c88 = arith.constant 88 : index
    %317 = memref.load %arg1[%c88] : memref<94xf32, #tpu.memory_space<smem>>
    %318 = vector.broadcast %317 : f32 to vector<8x1xf32>
    %319 = arith.mulf %318, %12 : vector<8x1xf32>
    %320 = arith.addf %316, %319 : vector<8x1xf32>
    %c89 = arith.constant 89 : index
    %321 = memref.load %arg1[%c89] : memref<94xf32, #tpu.memory_space<smem>>
    %322 = vector.broadcast %321 : f32 to vector<8x1xf32>
    %323 = arith.mulf %322, %16 : vector<8x1xf32>
    %324 = arith.addf %320, %323 : vector<8x1xf32>
    %c90 = arith.constant 90 : index
    %325 = memref.load %arg1[%c90] : memref<94xf32, #tpu.memory_space<smem>>
    %326 = vector.broadcast %325 : f32 to vector<8x1xf32>
    %327 = arith.mulf %326, %20 : vector<8x1xf32>
    %328 = arith.addf %324, %327 : vector<8x1xf32>
    %c91 = arith.constant 91 : index
    %329 = memref.load %arg1[%c91] : memref<94xf32, #tpu.memory_space<smem>>
    %330 = vector.broadcast %329 : f32 to vector<8x1xf32>
    %331 = arith.mulf %330, %24 : vector<8x1xf32>
    %332 = arith.addf %328, %331 : vector<8x1xf32>
    %c92 = arith.constant 92 : index
    %333 = memref.load %arg1[%c92] : memref<94xf32, #tpu.memory_space<smem>>
    %334 = vector.broadcast %333 : f32 to vector<8x1xf32>
    %335 = arith.mulf %334, %28 : vector<8x1xf32>
    %336 = arith.addf %332, %335 : vector<8x1xf32>
    %c93 = arith.constant 93 : index
    %337 = memref.load %arg1[%c93] : memref<94xf32, #tpu.memory_space<smem>>
    %338 = vector.broadcast %337 : f32 to vector<8x1xf32>
    %339 = arith.mulf %338, %32 : vector<8x1xf32>
    %340 = arith.addf %336, %339 : vector<8x1xf32>
    %c54 = arith.constant 54 : index
    %341 = memref.load %arg1[%c54] : memref<94xf32, #tpu.memory_space<smem>>
    %342 = vector.broadcast %341 : f32 to vector<8x1xf32>
    %343 = arith.mulf %342, %4 : vector<8x1xf32>
    %c58 = arith.constant 58 : index
    %344 = memref.load %arg1[%c58] : memref<94xf32, #tpu.memory_space<smem>>
    %345 = vector.broadcast %344 : f32 to vector<8x1xf32>
    %346 = arith.mulf %345, %8 : vector<8x1xf32>
    %347 = arith.addf %343, %346 : vector<8x1xf32>
    %c62 = arith.constant 62 : index
    %348 = memref.load %arg1[%c62] : memref<94xf32, #tpu.memory_space<smem>>
    %349 = vector.broadcast %348 : f32 to vector<8x1xf32>
    %350 = arith.mulf %349, %12 : vector<8x1xf32>
    %351 = arith.addf %347, %350 : vector<8x1xf32>
    %c66 = arith.constant 66 : index
    %352 = memref.load %arg1[%c66] : memref<94xf32, #tpu.memory_space<smem>>
    %353 = vector.broadcast %352 : f32 to vector<8x1xf32>
    %354 = arith.mulf %353, %16 : vector<8x1xf32>
    %355 = arith.addf %351, %354 : vector<8x1xf32>
    %c70 = arith.constant 70 : index
    %356 = memref.load %arg1[%c70] : memref<94xf32, #tpu.memory_space<smem>>
    %357 = vector.broadcast %356 : f32 to vector<8x1xf32>
    %358 = arith.mulf %357, %20 : vector<8x1xf32>
    %359 = arith.addf %355, %358 : vector<8x1xf32>
    %c74 = arith.constant 74 : index
    %360 = memref.load %arg1[%c74] : memref<94xf32, #tpu.memory_space<smem>>
    %361 = vector.broadcast %360 : f32 to vector<8x1xf32>
    %362 = arith.mulf %361, %24 : vector<8x1xf32>
    %363 = arith.addf %359, %362 : vector<8x1xf32>
    %c78 = arith.constant 78 : index
    %364 = memref.load %arg1[%c78] : memref<94xf32, #tpu.memory_space<smem>>
    %365 = vector.broadcast %364 : f32 to vector<8x1xf32>
    %366 = arith.mulf %365, %28 : vector<8x1xf32>
    %367 = arith.addf %363, %366 : vector<8x1xf32>
    %c82 = arith.constant 82 : index
    %368 = memref.load %arg1[%c82] : memref<94xf32, #tpu.memory_space<smem>>
    %369 = vector.broadcast %368 : f32 to vector<8x1xf32>
    %370 = arith.mulf %369, %32 : vector<8x1xf32>
    %371 = arith.addf %367, %370 : vector<8x1xf32>
    %372 = vector.extract_strided_slice %309 {offsets = [0, 0], sizes = [1, 128], strides = [1, 1]} : vector<8x128xf32> to vector<1x128xf32>
    %373 = vector.broadcast %371 : vector<8x1xf32> to vector<8x128xf32>
    %374 = vector.broadcast %372 : vector<1x128xf32> to vector<8x128xf32>
    %375 = arith.mulf %373, %374 : vector<8x128xf32>
    %376 = vector.broadcast %340 : vector<8x1xf32> to vector<8x128xf32>
    %377 = arith.addf %376, %375 : vector<8x128xf32>
    %c55 = arith.constant 55 : index
    %378 = memref.load %arg1[%c55] : memref<94xf32, #tpu.memory_space<smem>>
    %379 = vector.broadcast %378 : f32 to vector<8x1xf32>
    %380 = arith.mulf %379, %4 : vector<8x1xf32>
    %c59 = arith.constant 59 : index
    %381 = memref.load %arg1[%c59] : memref<94xf32, #tpu.memory_space<smem>>
    %382 = vector.broadcast %381 : f32 to vector<8x1xf32>
    %383 = arith.mulf %382, %8 : vector<8x1xf32>
    %384 = arith.addf %380, %383 : vector<8x1xf32>
    %c63 = arith.constant 63 : index
    %385 = memref.load %arg1[%c63] : memref<94xf32, #tpu.memory_space<smem>>
    %386 = vector.broadcast %385 : f32 to vector<8x1xf32>
    %387 = arith.mulf %386, %12 : vector<8x1xf32>
    %388 = arith.addf %384, %387 : vector<8x1xf32>
    %c67 = arith.constant 67 : index
    %389 = memref.load %arg1[%c67] : memref<94xf32, #tpu.memory_space<smem>>
    %390 = vector.broadcast %389 : f32 to vector<8x1xf32>
    %391 = arith.mulf %390, %16 : vector<8x1xf32>
    %392 = arith.addf %388, %391 : vector<8x1xf32>
    %c71 = arith.constant 71 : index
    %393 = memref.load %arg1[%c71] : memref<94xf32, #tpu.memory_space<smem>>
    %394 = vector.broadcast %393 : f32 to vector<8x1xf32>
    %395 = arith.mulf %394, %20 : vector<8x1xf32>
    %396 = arith.addf %392, %395 : vector<8x1xf32>
    %c75 = arith.constant 75 : index
    %397 = memref.load %arg1[%c75] : memref<94xf32, #tpu.memory_space<smem>>
    %398 = vector.broadcast %397 : f32 to vector<8x1xf32>
    %399 = arith.mulf %398, %24 : vector<8x1xf32>
    %400 = arith.addf %396, %399 : vector<8x1xf32>
    %c79 = arith.constant 79 : index
    %401 = memref.load %arg1[%c79] : memref<94xf32, #tpu.memory_space<smem>>
    %402 = vector.broadcast %401 : f32 to vector<8x1xf32>
    %403 = arith.mulf %402, %28 : vector<8x1xf32>
    %404 = arith.addf %400, %403 : vector<8x1xf32>
    %c83 = arith.constant 83 : index
    %405 = memref.load %arg1[%c83] : memref<94xf32, #tpu.memory_space<smem>>
    %406 = vector.broadcast %405 : f32 to vector<8x1xf32>
    %407 = arith.mulf %406, %32 : vector<8x1xf32>
    %408 = arith.addf %404, %407 : vector<8x1xf32>
    %409 = vector.extract_strided_slice %309 {offsets = [1, 0], sizes = [1, 128], strides = [1, 1]} : vector<8x128xf32> to vector<1x128xf32>
    %410 = vector.broadcast %408 : vector<8x1xf32> to vector<8x128xf32>
    %411 = vector.broadcast %409 : vector<1x128xf32> to vector<8x128xf32>
    %412 = arith.mulf %410, %411 : vector<8x128xf32>
    %413 = arith.addf %377, %412 : vector<8x128xf32>
    %c56 = arith.constant 56 : index
    %414 = memref.load %arg1[%c56] : memref<94xf32, #tpu.memory_space<smem>>
    %415 = vector.broadcast %414 : f32 to vector<8x1xf32>
    %416 = arith.mulf %415, %4 : vector<8x1xf32>
    %c60 = arith.constant 60 : index
    %417 = memref.load %arg1[%c60] : memref<94xf32, #tpu.memory_space<smem>>
    %418 = vector.broadcast %417 : f32 to vector<8x1xf32>
    %419 = arith.mulf %418, %8 : vector<8x1xf32>
    %420 = arith.addf %416, %419 : vector<8x1xf32>
    %c64 = arith.constant 64 : index
    %421 = memref.load %arg1[%c64] : memref<94xf32, #tpu.memory_space<smem>>
    %422 = vector.broadcast %421 : f32 to vector<8x1xf32>
    %423 = arith.mulf %422, %12 : vector<8x1xf32>
    %424 = arith.addf %420, %423 : vector<8x1xf32>
    %c68 = arith.constant 68 : index
    %425 = memref.load %arg1[%c68] : memref<94xf32, #tpu.memory_space<smem>>
    %426 = vector.broadcast %425 : f32 to vector<8x1xf32>
    %427 = arith.mulf %426, %16 : vector<8x1xf32>
    %428 = arith.addf %424, %427 : vector<8x1xf32>
    %c72 = arith.constant 72 : index
    %429 = memref.load %arg1[%c72] : memref<94xf32, #tpu.memory_space<smem>>
    %430 = vector.broadcast %429 : f32 to vector<8x1xf32>
    %431 = arith.mulf %430, %20 : vector<8x1xf32>
    %432 = arith.addf %428, %431 : vector<8x1xf32>
    %c76 = arith.constant 76 : index
    %433 = memref.load %arg1[%c76] : memref<94xf32, #tpu.memory_space<smem>>
    %434 = vector.broadcast %433 : f32 to vector<8x1xf32>
    %435 = arith.mulf %434, %24 : vector<8x1xf32>
    %436 = arith.addf %432, %435 : vector<8x1xf32>
    %c80 = arith.constant 80 : index
    %437 = memref.load %arg1[%c80] : memref<94xf32, #tpu.memory_space<smem>>
    %438 = vector.broadcast %437 : f32 to vector<8x1xf32>
    %439 = arith.mulf %438, %28 : vector<8x1xf32>
    %440 = arith.addf %436, %439 : vector<8x1xf32>
    %c84 = arith.constant 84 : index
    %441 = memref.load %arg1[%c84] : memref<94xf32, #tpu.memory_space<smem>>
    %442 = vector.broadcast %441 : f32 to vector<8x1xf32>
    %443 = arith.mulf %442, %32 : vector<8x1xf32>
    %444 = arith.addf %440, %443 : vector<8x1xf32>
    %445 = vector.extract_strided_slice %309 {offsets = [2, 0], sizes = [1, 128], strides = [1, 1]} : vector<8x128xf32> to vector<1x128xf32>
    %446 = vector.broadcast %444 : vector<8x1xf32> to vector<8x128xf32>
    %447 = vector.broadcast %445 : vector<1x128xf32> to vector<8x128xf32>
    %448 = arith.mulf %446, %447 : vector<8x128xf32>
    %449 = arith.addf %413, %448 : vector<8x128xf32>
    %c57 = arith.constant 57 : index
    %450 = memref.load %arg1[%c57] : memref<94xf32, #tpu.memory_space<smem>>
    %451 = vector.broadcast %450 : f32 to vector<8x1xf32>
    %452 = arith.mulf %451, %4 : vector<8x1xf32>
    %c61 = arith.constant 61 : index
    %453 = memref.load %arg1[%c61] : memref<94xf32, #tpu.memory_space<smem>>
    %454 = vector.broadcast %453 : f32 to vector<8x1xf32>
    %455 = arith.mulf %454, %8 : vector<8x1xf32>
    %456 = arith.addf %452, %455 : vector<8x1xf32>
    %c65 = arith.constant 65 : index
    %457 = memref.load %arg1[%c65] : memref<94xf32, #tpu.memory_space<smem>>
    %458 = vector.broadcast %457 : f32 to vector<8x1xf32>
    %459 = arith.mulf %458, %12 : vector<8x1xf32>
    %460 = arith.addf %456, %459 : vector<8x1xf32>
    %c69 = arith.constant 69 : index
    %461 = memref.load %arg1[%c69] : memref<94xf32, #tpu.memory_space<smem>>
    %462 = vector.broadcast %461 : f32 to vector<8x1xf32>
    %463 = arith.mulf %462, %16 : vector<8x1xf32>
    %464 = arith.addf %460, %463 : vector<8x1xf32>
    %c73 = arith.constant 73 : index
    %465 = memref.load %arg1[%c73] : memref<94xf32, #tpu.memory_space<smem>>
    %466 = vector.broadcast %465 : f32 to vector<8x1xf32>
    %467 = arith.mulf %466, %20 : vector<8x1xf32>
    %468 = arith.addf %464, %467 : vector<8x1xf32>
    %c77 = arith.constant 77 : index
    %469 = memref.load %arg1[%c77] : memref<94xf32, #tpu.memory_space<smem>>
    %470 = vector.broadcast %469 : f32 to vector<8x1xf32>
    %471 = arith.mulf %470, %24 : vector<8x1xf32>
    %472 = arith.addf %468, %471 : vector<8x1xf32>
    %c81 = arith.constant 81 : index
    %473 = memref.load %arg1[%c81] : memref<94xf32, #tpu.memory_space<smem>>
    %474 = vector.broadcast %473 : f32 to vector<8x1xf32>
    %475 = arith.mulf %474, %28 : vector<8x1xf32>
    %476 = arith.addf %472, %475 : vector<8x1xf32>
    %c85 = arith.constant 85 : index
    %477 = memref.load %arg1[%c85] : memref<94xf32, #tpu.memory_space<smem>>
    %478 = vector.broadcast %477 : f32 to vector<8x1xf32>
    %479 = arith.mulf %478, %32 : vector<8x1xf32>
    %480 = arith.addf %476, %479 : vector<8x1xf32>
    %481 = vector.extract_strided_slice %309 {offsets = [3, 0], sizes = [1, 128], strides = [1, 1]} : vector<8x128xf32> to vector<1x128xf32>
    %482 = vector.broadcast %480 : vector<8x1xf32> to vector<8x128xf32>
    %483 = vector.broadcast %481 : vector<1x128xf32> to vector<8x128xf32>
    %484 = arith.mulf %482, %483 : vector<8x128xf32>
    %485 = arith.addf %449, %484 : vector<8x128xf32>
    %c0_18 = arith.constant 0 : index
    %c0_19 = arith.constant 0 : index
    %486 = vector.load %arg3[%c0_18, %c0_19] : memref<10x128xf32, #tpu.memory_space<vmem>>, vector<8x128xf32>
    tpu.vector_store %arg3[%c0_18, %c0_19], %485 {strides = array<i32>} : memref<10x128xf32, #tpu.memory_space<vmem>>, vector<8x128xf32>,
    %c8_20 = arith.constant 8 : index
    %c0_21 = arith.constant 0 : index
    %487 = vector.load %arg3[%c8_20, %c0_21] : memref<10x128xf32, #tpu.memory_space<vmem>>, vector<1x128xf32>
    tpu.vector_store %arg3[%c8_20, %c0_21], %266 {strides = array<i32>} : memref<10x128xf32, #tpu.memory_space<vmem>>, vector<1x128xf32>,
    %c9_22 = arith.constant 9 : index
    %c0_23 = arith.constant 0 : index
    %488 = vector.load %arg3[%c9_22, %c0_23] : memref<10x128xf32, #tpu.memory_space<vmem>>, vector<1x128xf32>
    tpu.vector_store %arg3[%c9_22, %c0_23], %267 {strides = array<i32>} : memref<10x128xf32, #tpu.memory_space<vmem>>, vector<1x128xf32>,
    return
  }
  func.func @transform_0(%arg0: i32) -> i32 {
    %c0_i32 = arith.constant 0 : i32
    %c0_i32_0 = arith.constant 0 : i32
    return %c0_i32 : i32
  }
  func.func @transform_1(%arg0: i32) -> (i32, i32) {
    %c0_i32 = arith.constant 0 : i32
    %c0_i32_0 = arith.constant 0 : i32
    return %c0_i32, %arg0 : i32, i32
  }
  func.func @transform_2(%arg0: i32) -> (i32, i32) {
    %c0_i32 = arith.constant 0 : i32
    %c0_i32_0 = arith.constant 0 : i32
    return %c0_i32, %arg0 : i32, i32
  }
}

</mosaic_0001>

<bundles_post_ra>
// kernel: tpu_custom_call.1
= control target key start
LH: loop header
LB: loop body
LE: loop exit
PB: predicated region body
PF: predicated region fallthrough
CT: control target
= control target key end

     0   :  { %7 = vsyncpa [#allocation5], 0  ;;  %s1159_s0 = inlined_call_operand.hbm [shape: f32[94], index: 0, kind: input, shape index: {}]   ;;  %s1160_s1 = inlined_call_operand.hbm [shape: f32[9,128], index: 1, kind: input, shape index: {}]   ;;  %s1161_s2 = inlined_call_operand.hbm [shape: f32[10,128], index: 2, kind: output, shape index: {}]  }
   0x1   :  { %8 = vsyncpa [#allocation3], 0 }
   0x2   :  { %9 = vsyncpa [#allocation4], 0  ;;  %s735_s9 = smov [#allocation2]   ;;  %s736_s12 = smov [#allocation6]  }
   0x3   :  { %17 = dma.hbm_to_smem %s1159_s0, 16, %s735_s9, [#allocation5]  }
   0x4   :  { %s23_s13 = sshll.u32 %s736_s12, 4  ;;  %s24_s13 = int_to_ptr.vmem [resolvable:$true] %s23_s13 }
   0x5   :  { %s697_s14 = scalar_lea.vmem %s24_s13, 256  ;;  %p702_p1 = scmp.lt.s32.totalorder %s24_s13, %s24_s13 }
   0x6   :  { %p698_p0 = scmp.ne.s32.totalorder %s24_s13, %s697_s14  ;;  %p703_p2 = scmp.lt.s32.totalorder %s697_s14, %s697_s14 }
   0x8   :  { %p704_p3 = por %p703_p2, %p702_p1 }
   0xa   :  { %p705_p4 = pnand %p704_p3, %p698_p0 }
   0xc   :  { %708 = shalt.err (!%p705_p4)
}
   0xd   :  { %s737_s15 = smov 128   ;;  %s738_s16 = smov 8  }
   0xe   :  { %29 = dma.hbm_to_vmem [thread:$0]  %s1160_s1, 256, %s24_s13, [#allocation3], %s737_s15, %s737_s15, %s738_s16  }
   0xf   :  { %729 = dma.done.wait [#allocation5], 16  }
  0x10   :  { %730 = vsyncadd [#allocation5], 4294967280 }
  0x11   :  { %731 = dma.done.wait [#allocation3], 256  }
  0x12   :  { %732 = vsyncadd [#allocation3], 4294967040 }
  0x13   :  { %36 = sfence }
  0x14   :  { %v37_v0 = vlaneseq  ;;  %s568_s0 = sld [smem:[#allocation2 + $0x20]]  ;;  %v739_v2 = vmov 0.0   ;;  %v575_v37 = vld [vmem:[#allocation6] ss:$0 sm:$0xff]  ;;  %v580_v50 = vld [vmem:[#allocation6 + $0x1] ss:$0 sm:$0xff] }
  0x15   :  { %s569_s19 = sld [smem:[#allocation2 + $0x21]]  ;;  %v585_v63 = vld [vmem:[#allocation6 + $0x2] ss:$0 sm:$0xff] }
  0x16   :  { %v765_v1 = vshrl.u32 %v37_v0, 7  ;;  %s570_s20 = sld [smem:[#allocation2 + $0x22]] }
  0x17   :  { %s767_s21 = sld [smem:[#allocation2 + $0x23]] }
  0x18   :  { %vm39_vm0 = vcmp.eq.s32.totalorder %v765_v1, 0  ;;  %vm42_vm1 = vcmp.eq.s32.totalorder %v765_v1, 1  ;;  %s771_s22 = sld [smem:[#allocation2]]  ;;  %vm45_vm2 = vcmp.eq.s32.totalorder %v765_v1, 2  ;;  %vm48_vm3 = vcmp.eq.s32.totalorder %v765_v1, 3 }
  0x19   :  { %v773_v3 = vsel %vm39_vm0, 1.0, %v739_v2  ;;  %v775_v4 = vsel %vm42_vm1, 1.0, %v739_v2  ;;  %s572_s1 = sld [smem:[#allocation2 + $0x8]]  ;;  %vm51_vm4 = vcmp.eq.s32.totalorder %v765_v1, 4  ;;  %vm54_vm5 = vcmp.eq.s32.totalorder %v765_v1, 5 }
  0x1a   :  { %vm57_vm6 = vcmp.eq.s32.totalorder %v765_v1, 6  ;;  %vm60_vm7 = vcmp.eq.s32.totalorder %v765_v1, 7  ;;  %s573_s23 = sld [smem:[#allocation2 + $0x10]]  ;;  %v783_v5 = vsel %vm51_vm4, 1.0, %v739_v2  ;;  %v785_v6 = vsel %vm54_vm5, 1.0, %v739_v2 }
  0x1b   :  { %v787_v7 = vsel %vm57_vm6, 1.0, %v739_v2  ;;  %v789_v8 = vsel %vm60_vm7, 1.0, %v739_v2  ;;  %s574_s24 = sld [smem:[#allocation2 + $0x18]]  ;;  %v791_v9 = vsel %vm45_vm2, 1.0, %v739_v2  ;;  %v64_v10 = vstv %s568_s0 }
  0x1c   :  { %v67_v11 = vstv %s569_s19  ;;  %v71_v12 = vstv %s570_s20  ;;  %s576_s25 = sld [smem:[#allocation2 + $0x1]]  ;;  %v65_v13 = vmul.f32 %v773_v3, %v64_v10  ;;  %v800_v18 = vsel %vm48_vm3, 1.0, %v739_v2 }
  0x1d   :  { %v68_v14 = vmul.f32 %v775_v4, %v67_v11  ;;  %v72_v15 = vmul.f32 %v791_v9, %v71_v12  ;;  %s577_s26 = sld [smem:[#allocation2 + $0x9]]  ;;  %v75_v16 = vstv %s767_s21 }
  0x1e   :  { %v79_v17 = vstv %s771_s22  ;;  %s578_s27 = sld [smem:[#allocation2 + $0x11]]  ;;  %v76_v25 = vmul.f32 %v800_v18, %v75_v16 }
  0x1f   :  { %v69_v19 = vadd.f32 %v68_v14, %v65_v13  ;;  %v80_v20 = vmul.f32 %v773_v3, %v79_v17  ;;  %v82_v21 = vstv %s572_s1  ;;  %s579_s28 = sld [smem:[#allocation2 + $0x19]] }
  0x20   :  { %v83_v22 = vmul.f32 %v775_v4, %v82_v21  ;;  %v86_v23 = vstv %s573_s23  ;;  %s581_s29 = sld [smem:[#allocation2 + $0x2]] }
  0x21   :  { %v73_v24 = vadd.f32 %v72_v15, %v69_v19  ;;  %v87_v26 = vmul.f32 %v791_v9, %v86_v23  ;;  %v90_v27 = vstv %s574_s24  ;;  %s582_s30 = sld [smem:[#allocation2 + $0xa]] }
  0x22   :  { %v84_v28 = vadd.f32 %v83_v22, %v80_v20  ;;  %v91_v29 = vmul.f32 %v800_v18, %v90_v27  ;;  %v101_v30 = vstv %s576_s25  ;;  %s583_s3 = sld [smem:[#allocation2 + $0x12]]  ;;  %v590_v22 = vld [vmem:[#allocation6 + $0x3] ss:$0 sm:$0xff] }
  0x23   :  { %v102_v31 = vmul.f32 %v773_v3, %v101_v30  ;;  %v104_v32 = vstv %s577_s26  ;;  %s584_s4 = sld [smem:[#allocation2 + $0x1a]]  ;;  %v77_v36 = vadd.f32 %v76_v25, %v73_v24 }
  0x24   :  { %v88_v33 = vadd.f32 %v87_v26, %v84_v28  ;;  %v105_v34 = vmul.f32 %v775_v4, %v104_v32  ;;  %v108_v35 = vstv %s578_s27  ;;  %s809_s5 = sld [smem:[#allocation2 + $0x3]] }
  0x25   :  { %v109_v38 = vmul.f32 %v791_v9, %v108_v35  ;;  %v112_v39 = vstv %s579_s28  ;;  %s587_s6 = sld [smem:[#allocation2 + $0xb]] }
  0x26   :  { %v92_v40 = vadd.f32 %v91_v29, %v88_v33  ;;  %v106_v41 = vadd.f32 %v105_v34, %v102_v31  ;;  %v113_v42 = vmul.f32 %v800_v18, %v112_v39  ;;  %v123_v43 = vstv %s581_s29  ;;  %s813_s7 = sld [smem:[#allocation2 + $0x13]] }
  0x27   :  { %v124_v44 = vmul.f32 %v773_v3, %v123_v43  ;;  %v126_v45 = vstv %s582_s30  ;;  %s816_s8 = sld [smem:[#allocation2 + $0x1b]] }
  0x28   :  { %v98_v46 = vmul.f32 %v575_v37, %v92_v40  ;;  %v110_v47 = vadd.f32 %v109_v38, %v106_v41  ;;  %v127_v48 = vmul.f32 %v775_v4, %v126_v45  ;;  %v130_v49 = vstv %s583_s3  ;;  %s819_s9 = sld [smem:[#allocation2 + $0x4]] }
  0x29   :  { %v131_v51 = vmul.f32 %v791_v9, %v130_v49  ;;  %v134_v52 = vstv %s584_s4  ;;  %s592_s10 = sld [smem:[#allocation2 + $0xc]] }
  0x2a   :  { %v99_v53 = vadd.f32 %v98_v46, %v77_v36  ;;  %v114_v54 = vadd.f32 %v113_v42, %v110_v47  ;;  %v128_v55 = vadd.f32 %v127_v48, %v124_v44  ;;  %v135_v56 = vmul.f32 %v800_v18, %v134_v52  ;;  %s823_s11 = sld [smem:[#allocation2 + $0x14]]  ;;  %v595_v36 = vld [vmem:[#allocation6 + $0x4] ss:$0 sm:$0xff] }
  0x2b   :  { %v145_v57 = vstv %s809_s5  ;;  %v148_v58 = vstv %s587_s6  ;;  %s826_s12 = sld [smem:[#allocation2 + $0x1c]] }
  0x2c   :  { %v120_v59 = vmul.f32 %v580_v50, %v114_v54  ;;  %v132_v60 = vadd.f32 %v131_v51, %v128_v55  ;;  %v146_v61 = vmul.f32 %v773_v3, %v145_v57  ;;  %v149_v62 = vmul.f32 %v775_v4, %v148_v58  ;;  %s830_s13 = sld [smem:[#allocation2 + $0x5]]  ;;  %v600_v50 = vld [vmem:[#allocation6 + $0x5] ss:$0 sm:$0xff] }
  0x2d   :  { %v152_v0 = vstv %s813_s7  ;;  %v156_v2 = vstv %s816_s8  ;;  %s834_s14 = sld [smem:[#allocation2 + $0xd]] }
  0x2e   :  { %v121_v10 = vadd.f32 %v120_v59, %v99_v53  ;;  %v136_v11 = vadd.f32 %v135_v56, %v132_v60  ;;  %v150_v12 = vadd.f32 %v149_v62, %v146_v61  ;;  %v153_v13 = vmul.f32 %v791_v9, %v152_v0  ;;  %s837_s17 = sld [smem:[#allocation2 + $0x15]]  ;;  %v605_v0 = vld [vmem:[#allocation6 + $0x6] ss:$0 sm:$0xff] }
  0x2f   :  { %v157_v14 = vmul.f32 %v800_v18, %v156_v2  ;;  %v167_v15 = vstv %s819_s9  ;;  %v170_v16 = vstv %s592_s10  ;;  %s841_s18 = sld [smem:[#allocation2 + $0x1d]] }
  0x30   :  { %v142_v17 = vmul.f32 %v585_v63, %v136_v11  ;;  %v154_v19 = vadd.f32 %v153_v13, %v150_v12  ;;  %v168_v20 = vmul.f32 %v773_v3, %v167_v15  ;;  %v171_v21 = vmul.f32 %v775_v4, %v170_v16  ;;  %s845_s0 = sld [smem:[#allocation2 + $0x6]] }
  0x31   :  { %v174_v23 = vstv %s823_s11  ;;  %v178_v24 = vstv %s826_s12  ;;  %s849_s19 = sld [smem:[#allocation2 + $0xe]] }
  0x32   :  { %v143_v25 = vadd.f32 %v142_v17, %v121_v10  ;;  %v158_v26 = vadd.f32 %v157_v14, %v154_v19  ;;  %v172_v27 = vadd.f32 %v171_v21, %v168_v20  ;;  %v175_v28 = vmul.f32 %v791_v9, %v174_v23  ;;  %s852_s20 = sld [smem:[#allocation2 + $0x16]]  ;;  %v610_v19 = vld [vmem:[#allocation6 + $0x7] ss:$0 sm:$0xff] }
  0x33   :  { %v179_v29 = vmul.f32 %v800_v18, %v178_v24  ;;  %v189_v30 = vstv %s830_s13  ;;  %v192_v31 = vstv %s834_s14  ;;  %s857_s21 = sld [smem:[#allocation2 + $0x1e]] }
  0x34   :  { %v164_v32 = vmul.f32 %v590_v22, %v158_v26  ;;  %v176_v33 = vadd.f32 %v175_v28, %v172_v27  ;;  %v190_v34 = vmul.f32 %v773_v3, %v189_v30  ;;  %v193_v35 = vmul.f32 %v775_v4, %v192_v31  ;;  %s861_s22 = sld [smem:[#allocation2 + $0x7]] }
  0x35   :  { %v196_v37 = vstv %s837_s17  ;;  %v200_v38 = vstv %s841_s18  ;;  %s865_s1 = sld [smem:[#allocation2 + $0xf]]  ;;  %v931_v27 = vsub.s32 0, %v765_v1  ;;  %v284_v31 = vsub.s32 1, %v765_v1 }
  0x36   :  { %v165_v39 = vadd.f32 %v164_v32, %v143_v25  ;;  %v180_v40 = vadd.f32 %v179_v29, %v176_v33  ;;  %v194_v41 = vadd.f32 %v193_v35, %v190_v34  ;;  %v197_v42 = vmul.f32 %v791_v9, %v196_v37  ;;  %s868_s23 = sld [smem:[#allocation2 + $0x17]] }
  0x37   :  { %v201_v43 = vmul.f32 %v800_v18, %v200_v38  ;;  %v211_v44 = vstv %s845_s0  ;;  %v214_v45 = vstv %s849_s19  ;;  %s873_s24 = sld [smem:[#allocation2 + $0x1f]]  ;;  %v297_v35 = vsub.s32 2, %v765_v1 }
  0x38   :  { %v186_v46 = vmul.f32 %v595_v36, %v180_v40  ;;  %v198_v47 = vadd.f32 %v197_v42, %v194_v41  ;;  %v212_v48 = vmul.f32 %v773_v3, %v211_v44  ;;  %v215_v49 = vmul.f32 %v775_v4, %v214_v45  ;;  %s877_s25 = sld [smem:[#allocation2 + $0x2c]] }
  0x39   :  { %v218_v51 = vstv %s852_s20  ;;  %v222_v52 = vstv %s857_s21  ;;  %s881_s26 = sld [smem:[#allocation2 + $0x2d]] }
  0x3a   :  { %v187_v53 = vadd.f32 %v186_v46, %v165_v39  ;;  %v202_v54 = vadd.f32 %v201_v43, %v198_v47  ;;  %v216_v55 = vadd.f32 %v215_v49, %v212_v48  ;;  %v219_v56 = vmul.f32 %v791_v9, %v218_v51  ;;  %s884_s27 = sld [smem:[#allocation2 + $0x24]] }
  0x3b   :  { %v223_v57 = vmul.f32 %v800_v18, %v222_v52  ;;  %v233_v58 = vstv %s861_s22  ;;  %v236_v59 = vstv %s865_s1  ;;  %s889_s28 = sld [smem:[#allocation2 + $0x28]] }
  0x3c   :  { %v208_v60 = vmul.f32 %v600_v50, %v202_v54  ;;  %v220_v61 = vadd.f32 %v219_v56, %v216_v55  ;;  %v234_v62 = vmul.f32 %v773_v3, %v233_v58  ;;  %v237_v63 = vmul.f32 %v775_v4, %v236_v59  ;;  %s893_s29 = sld [smem:[#allocation2 + $0x25]] }
  0x3d   :  { %v240_v2 = vstv %s868_s23  ;;  %v244_v10 = vstv %s873_s24  ;;  %s897_s30 = sld [smem:[#allocation2 + $0x29]] }
  0x3e   :  { %v209_v11 = vadd.f32 %v208_v60, %v187_v53  ;;  %v224_v12 = vadd.f32 %v223_v57, %v220_v61  ;;  %v238_v13 = vadd.f32 %v237_v63, %v234_v62  ;;  %v241_v14 = vmul.f32 %v791_v9, %v240_v2  ;;  %s900_s3 = sld [smem:[#allocation2 + $0x26]] }
  0x3f   :  { %v245_v15 = vmul.f32 %v800_v18, %v244_v10  ;;  %s903_s4 = sld [smem:[#allocation2 + $0x2a]]  ;;  %v256_v24 = vstv %s877_s25  ;;  %v259_v25 = vstv %s881_s26  ;;  %v310_v53 = vsub.s32 3, %v765_v1 }
  0x40   :  { %v230_v16 = vmul.f32 %v605_v0, %v224_v12  ;;  %v242_v17 = vadd.f32 %v241_v14, %v238_v13  ;;  %s905_s5 = sld [smem:[#allocation2 + $0x27]]  ;;  %v263_v26 = vstv %s884_s27  ;;  %v257_v32 = vmul.f32 %v773_v3, %v256_v24 }
  0x41   :  { %s907_s6 = sld [smem:[#allocation2 + $0x2b]]  ;;  %v266_v28 = vstv %s889_s28  ;;  %v260_v36 = vmul.f32 %v775_v4, %v259_v25  ;;  %v264_v37 = vmul.f32 %v773_v3, %v263_v26 }
  0x42   :  { %v231_v20 = vadd.f32 %v230_v16, %v209_v11  ;;  %v246_v21 = vadd.f32 %v245_v15, %v242_v17  ;;  %s909_s7 = sld [smem:[#allocation2 + $0x2e]]  ;;  %v276_v29 = vstv %s893_s29  ;;  %v267_v40 = vmul.f32 %v775_v4, %v266_v28 }
  0x43   :  { %s911_s8 = sld [smem:[#allocation2 + $0x2f]]  ;;  %v279_v30 = vstv %s897_s30  ;;  %v277_v41 = vmul.f32 %v773_v3, %v276_v29  ;;  %v261_v52 = vadd.f32 %v260_v36, %v257_v32 }
  0x44   :  { %v252_v22 = vmul.f32 %v610_v19, %v246_v21  ;;  %s913_s9 = sld [smem:[#allocation2 + $0x30]]  ;;  %v289_v33 = vstv %s900_s3  ;;  %v280_v42 = vmul.f32 %v775_v4, %v279_v30  ;;  %v268_v56 = vadd.f32 %v267_v40, %v264_v37 }
  0x45   :  { %s915_s10 = sld [smem:[#allocation2 + $0x31]]  ;;  %v292_v34 = vstv %s903_s4  ;;  %v290_v44 = vmul.f32 %v773_v3, %v289_v33 }
  0x46   :  { %v253_v23 = vadd.f32 %v252_v22, %v231_v20  ;;  %s917_s11 = sld [smem:[#allocation2 + $0x32]]  ;;  %v302_v38 = vstv %s905_s5  ;;  %v293_v45 = vmul.f32 %v775_v4, %v292_v34  ;;  %v281_v57 = vadd.f32 %v280_v42, %v277_v41 }
  0x47   :  { %s919_s12 = sld [smem:[#allocation2 + $0x33]]  ;;  %v305_v39 = vstv %s907_s6  ;;  %v303_v48 = vmul.f32 %v773_v3, %v302_v38 }
  0x48   :  { %675 = vtanh.f32 %v253_v23  ;;  %s921_s13 = sld [smem:[#allocation2 + $0x34]]  ;;  %v306_v49 = vmul.f32 %v775_v4, %v305_v39  ;;  %v294_v61 = vadd.f32 %v293_v45, %v290_v44  ;;  %v324_v62 = vstv %s909_s7 }
  0x49   :  { %s923_s14 = sld [smem:[#allocation2 + $0x35]] }
  0x4a   :  { %s629_s17 = sld [smem:[#allocation2 + $0x56]]  ;;  %v307_v12 = vadd.f32 %v306_v49, %v303_v48 }
  0x4b   :  { %s926_s18 = sld [smem:[#allocation2 + $0x57]] }
  0x4c   :  { %s933_s0 = sld [smem:[#allocation2 + $0x58]] }
  0x4d   :  { %s939_s19 = sld [smem:[#allocation2 + $0x59]] }
  0x4e   :  { %s945_s20 = sld [smem:[#allocation2 + $0x5a]] }
  0x4f   :  { %s951_s21 = sld [smem:[#allocation2 + $0x5b]] }
  0x50   :  { %v361_v43 = vstv %s629_s17  ;;  %s956_s22 = sld [smem:[#allocation2 + $0x5c]] }
  0x51   :  { %v362_v46 = vmul.f32 %v773_v3, %v361_v43  ;;  %v364_v47 = vstv %s926_s18  ;;  %s962_s1 = sld [smem:[#allocation2 + $0x5d]] }
  0x52   :  { %v365_v50 = vmul.f32 %v775_v4, %v364_v47  ;;  %v368_v51 = vstv %s933_s0  ;;  %s968_s23 = sld [smem:[#allocation2 + $0x36]]  ;;  %v327_v47 = vstv %s911_s8 }
  0x53   :  { %v369_v54 = vmul.f32 %v791_v9, %v368_v51  ;;  %v372_v55 = vstv %s939_s19  ;;  %s973_s24 = sld [smem:[#allocation2 + $0x3a]] }
  0x54   :  { %v366_v58 = vadd.f32 %v365_v50, %v362_v46  ;;  %v376_v59 = vstv %s945_s20  ;;  %s976_s25 = sld [smem:[#allocation2 + $0x3e]]  ;;  %v373_v63 = vmul.f32 %v800_v18, %v372_v55  ;;  %v1023_v46 = vmul.f32 %v773_v3, %v324_v62 }
  0x55   :  { %v676_v60 = vpop.eup %675  ;;  %v380_v0 = vstv %s951_s21  ;;  %s981_s26 = sld [smem:[#allocation2 + $0x42]]  ;;  %v377_v15 = vmul.f32 %v783_v5, %v376_v59 }
  0x56   :  { %v272_v2 = vrot.slane %v676_v60, %v931_v27  ;;  %v285_v10 = vrot.slane %v676_v60, %v284_v31  ;;  %v298_v11 = vrot.slane %v676_v60, %v297_v35  ;;  %s988_s27 = sld [smem:[#allocation2 + $0x46]]  ;;  %v311_v13 = vrot.slane %v676_v60, %v310_v53 }
  0x57   :  { %v370_v14 = vadd.f32 %v369_v54, %v366_v58  ;;  %v384_v16 = vstv %s956_s22  ;;  %s994_s28 = sld [smem:[#allocation2 + $0x4a]]  ;;  %v381_v20 = vmul.f32 %v785_v6, %v380_v0  ;;  %v388_v21 = vstv %s962_s1 }
  0x58   :  { %v273_v17 = vmul.f32 %v272_v2, %v268_v56  ;;  %v286_v19 = vmul.f32 %v285_v10, %v281_v57  ;;  %s998_s29 = sld [smem:[#allocation2 + $0x4e]]  ;;  %v299_v22 = vmul.f32 %v298_v11, %v294_v61  ;;  %v385_v24 = vmul.f32 %v787_v7, %v384_v16 }
  0x59   :  { %v374_v23 = vadd.f32 %v373_v63, %v370_v14  ;;  %v392_v25 = vstv %s968_s23  ;;  %s1002_s30 = sld [smem:[#allocation2 + $0x52]]  ;;  %v395_v29 = vstv %s973_s24  ;;  %v312_v38 = vmul.f32 %v311_v13, %v307_v12 }
  0x5a   :  { %v274_v26 = vadd.f32 %v273_v17, %v261_v52  ;;  %v393_v28 = vmul.f32 %v773_v3, %v392_v25  ;;  %v399_v30 = vstv %s976_s25  ;;  %s1007_s3 = sld [smem:[#allocation2 + $0x37]]  ;;  %v396_v33 = vmul.f32 %v775_v4, %v395_v29 }
  0x5b   :  { %v378_v32 = vadd.f32 %v377_v15, %v374_v23  ;;  %v400_v34 = vmul.f32 %v791_v9, %v399_v30  ;;  %v403_v36 = vstv %s981_s26  ;;  %s1012_s4 = sld [smem:[#allocation2 + $0x3b]]  ;;  %v389_v39 = vmul.f32 %v789_v8, %v388_v21 }
  0x5c   :  { %v287_v37 = vadd.f32 %v286_v19, %v274_v26  ;;  %v407_v40 = vstv %s988_s27  ;;  %s1016_s5 = sld [smem:[#allocation2 + $0x3f]]  ;;  %v397_v42 = vadd.f32 %v396_v33, %v393_v28  ;;  %v404_v43 = vmul.f32 %v800_v18, %v403_v36 }
  0x5d   :  { %v382_v41 = vadd.f32 %v381_v20, %v378_v32  ;;  %v411_v44 = vstv %s994_s28  ;;  %s1020_s6 = sld [smem:[#allocation2 + $0x43]]  ;;  %v408_v50 = vmul.f32 %v783_v5, %v407_v40  ;;  %v328_v16 = vmul.f32 %v775_v4, %v327_v47 }
  0x5e   :  { %v300_v45 = vadd.f32 %v299_v22, %v287_v37  ;;  %s1025_s7 = sld [smem:[#allocation2 + $0x47]]  ;;  %v401_v49 = vadd.f32 %v400_v34, %v397_v42  ;;  %v412_v52 = vmul.f32 %v785_v6, %v411_v44  ;;  %v415_v54 = vstv %s998_s29 }
  0x5f   :  { %v386_v48 = vadd.f32 %v385_v24, %v382_v41  ;;  %s1029_s17 = sld [smem:[#allocation2 + $0x4b]]  ;;  %v419_v61 = vstv %s1002_s30  ;;  %v416_v2 = vmul.f32 %v787_v7, %v415_v54  ;;  %v331_v21 = vstv %s913_s9 }
  0x60   :  { %v1031_v51 = vadd.f32 %v312_v38, %v300_v45  ;;  %v429_v55 = vstv %s1007_s3  ;;  %s1036_s18 = sld [smem:[#allocation2 + $0x4f]]  ;;  %v405_v57 = vadd.f32 %v404_v43, %v401_v49  ;;  %v420_v19 = vmul.f32 %v789_v8, %v419_v61 }
  0x61   :  { %v1038_v56 = vadd.f32 %v389_v39, %v386_v48  ;;  %v430_v58 = vmul.f32 %v773_v3, %v429_v55  ;;  %v432_v59 = vstv %s1012_s4  ;;  %s1042_s8 = sld [smem:[#allocation2 + $0x53]]  ;;  %v335_v24 = vstv %s915_s10 }
  0x62   :  { %v315_v60 = vmul.f32 0.5, %v1031_v51  ;;  %v433_v62 = vmul.f32 %v775_v4, %v432_v59  ;;  %v436_v63 = vstv %s1016_s5  ;;  %s1048_s0 = sld [smem:[#allocation2 + $0x38]]  ;;  %540 = vst [vmem:[#allocation7 + $0x8] sm:$0x3] %v1031_v51   ;;  %v409_v0 = vadd.f32 %v408_v50, %v405_v57 }
  0x63   :  { %v437_v10 = vmul.f32 %v791_v9, %v436_v63  ;;  %v440_v11 = vstv %s1020_s6  ;;  %s1054_s19 = sld [smem:[#allocation2 + $0x3c]]  ;;  %v339_v25 = vstv %s917_s11  ;;  %v342_v34 = vstv %s919_s12 }
  0x64   :  { %v316_v12 = vmul.f32 1.442695, %v315_v60  ;;  %v434_v13 = vadd.f32 %v433_v62, %v430_v58  ;;  %v441_v14 = vmul.f32 %v800_v18, %v440_v11  ;;  %v444_v15 = vstv %s1025_s7  ;;  %s1058_s20 = sld [smem:[#allocation2 + $0x40]] }
  0x65   :  { %v413_v17 = vadd.f32 %v412_v52, %v409_v0  ;;  %v448_v20 = vstv %s1029_s17  ;;  %s1063_s21 = sld [smem:[#allocation2 + $0x44]]  ;;  %v445_v23 = vmul.f32 %v783_v5, %v444_v15  ;;  %v346_v43 = vstv %s921_s13 }
  0x66   :  { %677 = vpow2.f32 %v316_v12  ;;  %v438_v22 = vadd.f32 %v437_v10, %v434_v13  ;;  %s1067_s22 = sld [smem:[#allocation2 + $0x48]]  ;;  %v452_v28 = vstv %s1036_s18  ;;  %v449_v30 = vmul.f32 %v785_v6, %v448_v20 }
  0x67   :  { %v417_v26 = vadd.f32 %v416_v2, %v413_v17  ;;  %s1072_s1 = sld [smem:[#allocation2 + $0x4c]]  ;;  %v456_v32 = vstv %s1042_s8  ;;  %v453_v40 = vmul.f32 %v787_v7, %v452_v28  ;;  %v332_v54 = vmul.f32 %v791_v9, %v331_v21 }
  0x68   :  { %v442_v29 = vadd.f32 %v441_v14, %v438_v22  ;;  %v466_v33 = vstv %s1048_s0  ;;  %s1077_s9 = sld [smem:[#allocation2 + $0x50]]  ;;  %v457_v44 = vmul.f32 %v789_v8, %v456_v32  ;;  %v340_v55 = vmul.f32 %v773_v3, %v339_v25 }
  0x69   :  { %v1080_v36 = vadd.f32 %v420_v19, %v417_v26  ;;  %v467_v37 = vmul.f32 %v773_v3, %v466_v33  ;;  %v469_v38 = vstv %s1054_s19  ;;  %s1084_s10 = sld [smem:[#allocation2 + $0x54]]  ;;  %v343_v57 = vmul.f32 %v775_v4, %v342_v34 }
  0x6a   :  { %v446_v39 = vadd.f32 %v445_v23, %v442_v29  ;;  %v470_v41 = vmul.f32 %v775_v4, %v469_v38  ;;  %v473_v42 = vstv %s1058_s20  ;;  %s1089_s11 = sld [smem:[#allocation2 + $0x39]]  ;;  %v329_v59 = vadd.f32 %v328_v16, %v1023_v46 }
  0x6b   :  { %v474_v45 = vmul.f32 %v791_v9, %v473_v42  ;;  %v477_v47 = vstv %s1063_s21  ;;  %s1095_s12 = sld [smem:[#allocation2 + $0x3d]]  ;;  %v336_v63 = vmul.f32 %v800_v18, %v335_v24  ;;  %v347_v0 = vmul.f32 %v791_v9, %v346_v43  ;;  %v314_v24 = vld [vmem:[#allocation6 + $0x8] sm:$0x1] }
  0x6c   :  { %v450_v48 = vadd.f32 %v449_v30, %v446_v39  ;;  %v471_v49 = vadd.f32 %v470_v41, %v467_v37  ;;  %v478_v50 = vmul.f32 %v800_v18, %v477_v47  ;;  %v481_v52 = vstv %s1067_s22  ;;  %s1099_s23 = sld [smem:[#allocation2 + $0x41]] }
  0x6d   :  { %v485_v58 = vstv %s1072_s1  ;;  %s1105_s13 = sld [smem:[#allocation2 + $0x45]]  ;;  %v482_v62 = vmul.f32 %v783_v5, %v481_v52  ;;  %v344_v14 = vadd.f32 %v343_v57, %v340_v55  ;;  %v350_v15 = vstv %s923_s14  ;;  %s740_s14 = smov [#allocation7]  }
  0x6e   :  { %v454_v60 = vadd.f32 %v453_v40, %v450_v48  ;;  %v475_v61 = vadd.f32 %v474_v45, %v471_v49  ;;  %s1109_s24 = sld [smem:[#allocation2 + $0x49]]  ;;  %v486_v2 = vmul.f32 %v785_v6, %v485_v58  ;;  %v489_v10 = vstv %s1077_s9  ;;  %s547_s28 = sshll.u32 %s740_s14, 4  ;;  %s548_s28 = int_to_ptr.vmem [resolvable:$true] %s547_s28 }
  0x6f   :  { %s1115_s25 = sld [smem:[#allocation2 + $0x4d]]  ;;  %v493_v12 = vstv %s1084_s10  ;;  %v490_v20 = vmul.f32 %v787_v7, %v489_v10  ;;  %v333_v25 = vadd.f32 %v332_v54, %v329_v59  ;;  %v348_v34 = vadd.f32 %v347_v0, %v344_v14  ;;  %s709_s29 = scalar_lea.vmem %s548_s28, 256 }
  0x70   :  { %v458_v11 = vadd.f32 %v457_v44, %v454_v60  ;;  %v479_v46 = vadd.f32 %v478_v50, %v475_v61  ;;  %v503_v13 = vstv %s1089_s11  ;;  %s1119_s26 = sld [smem:[#allocation2 + $0x51]]  ;;  %v494_v26 = vmul.f32 %v789_v8, %v493_v12  ;;  %p710_p5 = scmp.ne.s32.totalorder %s548_s28, %s709_s29 }
  0x71   :  { %v504_v16 = vmul.f32 %v773_v3, %v503_v13  ;;  %v506_v17 = vstv %s1095_s12  ;;  %s1124_s27 = sld [smem:[#allocation2 + $0x55]]  ;;  %v351_v37 = vmul.f32 %v800_v18, %v350_v15  ;;  %v337_v43 = vadd.f32 %v336_v63, %v333_v25  ;;  %p714_p6 = scmp.lt.s32.totalorder %s548_s28, %s548_s28 }
  0x72   :  { %v483_v19 = vadd.f32 %v482_v62, %v479_v46  ;;  %v507_v21 = vmul.f32 %v775_v4, %v506_v17  ;;  %v510_v22 = vstv %s1099_s23  ;;  %p715_p7 = scmp.lt.s32.totalorder %s709_s29, %s709_s29 }
  0x73   :  { %v678_v23 = vpop.eup %677  ;;  %v511_v28 = vmul.f32 %v791_v9, %v510_v22  ;;  %v514_v3 = vstv %s1105_s13  ;;  %v352_v50 = vadd.f32 %v351_v37, %v348_v34 }
  0x74   :  { %v319_v29 = vrot.slane %v678_v23, 1  ;;  %v487_v30 = vadd.f32 %v486_v2, %v483_v19  ;;  %v508_v32 = vadd.f32 %v507_v21, %v504_v16  ;;  %v515_v33 = vmul.f32 %v800_v18, %v514_v3  ;;  %p716_p8 = por %p715_p7, %p714_p6 }
  0x75   :  { %v518_v4 = vstv %s1109_s24  ;;  %v522_v38 = vstv %s1115_s25 }
  0x76   :  { %v321_v39 = vmul.f32 %v319_v29, %v314_v24  ;;  %v491_v40 = vadd.f32 %v490_v20, %v487_v30  ;;  %v512_v41 = vadd.f32 %v511_v28, %v508_v32  ;;  %v519_v42 = vmul.f32 %v783_v5, %v518_v4  ;;  %p717_p9 = pnand %p716_p8, %p710_p5 }
  0x77   :  { %v526_v44 = vstv %s1119_s26  ;;  %v523_v48 = vmul.f32 %v785_v6, %v522_v38  ;;  %v530_v49 = vstv %s1124_s27 }
  0x78   :  { %v322_v9 = vadd.f32 %v321_v39, %v1031_v51  ;;  %v495_v45 = vadd.f32 %v494_v26, %v491_v40  ;;  %v516_v47 = vadd.f32 %v515_v33, %v512_v41  ;;  %v527_v54 = vmul.f32 %v787_v7, %v526_v44 }
  0x79   :  { %v531_v58 = vmul.f32 %v789_v8, %v530_v49 }
  0x7a   :  { %v356_v52 = vrot.slane %v322_v9, %v931_v27  ;;  %v520_v18 = vadd.f32 %v519_v42, %v516_v47 }
  0x7c   :  { %v357_v55 = vmul.f32 %v356_v52, %v337_v43  ;;  %v524_v57 = vadd.f32 %v523_v48, %v520_v18 }
  0x7e   :  { %v358_v5 = vadd.f32 %v357_v55, %v352_v50  ;;  %v528_v59 = vadd.f32 %v527_v54, %v524_v57 }
  0x80   :  { %679 = vtanh.f32 %v358_v5  ;;  %v532_v60 = vadd.f32 %v531_v58, %v528_v59 }
  0x8d   :  { %v680_v51 = vpop.eup %679 }
  0x8e   :  { %v425_v61 = vrot.slane %v680_v51, %v931_v27  ;;  %v462_v6 = vrot.slane %v680_v51, %v284_v31  ;;  %v499_v62 = vrot.slane %v680_v51, %v297_v35  ;;  %v536_v0 = vrot.slane %v680_v51, %v310_v53 }
  0x90   :  { %v426_v63 = vmul.f32 %v425_v61, %v1080_v36  ;;  %v463_v7 = vmul.f32 %v462_v6, %v458_v11  ;;  %v500_v2 = vmul.f32 %v499_v62, %v495_v45  ;;  %v537_v46 = vmul.f32 %v536_v0, %v532_v60 }
  0x92   :  { %v427_v8 = vadd.f32 %v426_v63, %v1038_v56 }
  0x94   :  { %v464_v10 = vadd.f32 %v463_v7, %v427_v8 }
  0x96   :  { %v501_v27 = vadd.f32 %v500_v2, %v464_v10 }
  0x98   :  { %v538_v12 = vadd.f32 %v537_v46, %v501_v27 }
  0x9a   :  { %539 = vst [vmem:[#allocation7] sm:$0xff] %v538_v12 }
  0x9b   :  { %720 = shalt.err (!%p717_p9)
}
  0x9c   :  { %553 = dma.vmem_to_hbm [thread:$0]  %s548_s28, 256, %s1161_s2, [#allocation4], %s737_s15, %s737_s15, %s738_s16  }
  0x9d   :  { %733 = dma.done.wait [#allocation4], 256  }
  0x9e   :  { %734 = vsyncadd [#allocation4], 4294967040 }
  0x9f   :  { %557 = vsyncpa [#allocation3], 1 }
  0xa0   :  { %558 = vsyncpa [#allocation4], 1 }
  0xa1   :  { %559 = vsyncpa [#allocation5], 1 }

</bundles_post_ra>
